<compile_context>
chip_gen: v6e
topology: v6e:2x2x1
jax: 0.10.0
libtpu: 0.0.40
codegen_flags: <defaults>
</compile_context>

<pallas_src>
import math

import jax
import jax.numpy as jnp
from jax.experimental import pallas as pl
from jax.experimental.pallas import tpu as pltpu


# ----------------------------------------------------------------------------
# Single fused kernel: both GCN passes + target-node row selection.
# ----------------------------------------------------------------------------
def _gcn_two_pass_kernel(t_ref, a1_ref, cnt_ref, x_ref, w1_ref, b1_ref,
                         w2_ref, b2_ref, p_ref):
    n = a1_ref.shape[0]

    # A1[dst,src] = sum sigmoid(mask);  A2 = CNT - A1  (== scatter of 1-sigmoid,
    # correct even with duplicate edges).
    a1 = a1_ref[...]                      # (N, N) f32
    a2 = cnt_ref[...] - a1                # (N, N) f32, one VPU sub

    # Shared X @ W1 (bf16 operands, f32 accumulation on the MXU).
    xw = jnp.dot(x_ref[...], w1_ref[...],
                 preferred_element_type=jnp.float32)          # (N, H) f32
    xw_bf = xw.astype(jnp.bfloat16)

    # Batched first-layer aggregation for BOTH passes: (2N, N) @ (N, H).
    a_both = jnp.concatenate([a1, a2], axis=0).astype(jnp.bfloat16)
    h = jnp.maximum(
        jnp.dot(a_both, xw_bf, preferred_element_type=jnp.float32)
        + b1_ref[...],
        0.0)                                                  # (2N, H) f32

    hw = jnp.dot(h.astype(jnp.bfloat16), w2_ref[...],
                 preferred_element_type=jnp.float32)          # (2N, C) f32

    # Only the target node's row of the second aggregation is needed:
    #   pred_k[t] = A_k[t, :] @ (H_k @ W2) + b2
    t = t_ref[0]
    a1_row = a1_ref[pl.ds(t, 1), :]                           # (1, N) f32
    a2_row = cnt_ref[pl.ds(t, 1), :] - a1_row                 # (1, N) f32

    p1 = jnp.dot(a1_row, hw[:n, :], preferred_element_type=jnp.float32)
    p2 = jnp.dot(a2_row, hw[n:, :], preferred_element_type=jnp.float32)

    p_ref[...] = jnp.concatenate([p1, p2], axis=0) + b2_ref[...]   # (2, C)


def gcn_two_pass(target, a1, cnt, x, w1, b1, w2, b2):
    n, f = x.shape
    h = w1.shape[1]
    c = w2.shape[1]
    full = lambda shape: pl.BlockSpec(shape, lambda i, t: (0,) * len(shape))
    p = pl.pallas_call(
        _gcn_two_pass_kernel,
        out_shape=jax.ShapeDtypeStruct((2, c), jnp.float32),
        grid_spec=pltpu.PrefetchScalarGridSpec(
            num_scalar_prefetch=1,
            grid=(1,),
            in_specs=[
                full((n, n)),   # A1  (f32: keeps the dynamic sublane ref-slice simple)
                full((n, n)),   # CNT (f32)
                full((n, f)),   # X   (bf16)
                full((f, h)),   # W1  (bf16)
                full((1, h)),   # b1  (f32)
                full((h, c)),   # W2  (bf16)
                full((1, c)),   # b2  (f32)
            ],
            out_specs=full((2, c)),
        ),
        compiler_params=pltpu.CompilerParams(
            dimension_semantics=("arbitrary",)),
    )(target, a1, cnt, x, w1, b1, w2, b2)
    return p[0], p[1]


# ----------------------------------------------------------------------------
# Module-equivalent forward
# ----------------------------------------------------------------------------
def explain_model_node_multi_forward(params, x, edge_index, target_node):
    num_nodes = x.shape[0]
    src = edge_index[0]
    dst = edge_index[1]

    # Sigmoid of the learnable edge mask; XLA fuses this with the scatter
    # (a 40-element vector -> no separate pallas_call / HBM round trip).
    ew = jax.nn.sigmoid(params["adj_mask"])

    # TODO(synk): scatter of per-edge weights into a dense adjacency has no
    # clean Pallas equivalent; done as plain-JAX glue (duplicate edges add,
    # matching PyG weighted-message aggregation at dst).
    a1 = jnp.zeros((num_nodes, num_nodes), jnp.float32).at[dst, src].add(ew)
    # Weight-independent edge-count matrix; A2 = CNT - A1 is formed in-kernel.
    cnt = jnp.zeros((num_nodes, num_nodes), jnp.float32).at[dst, src].add(1.0)

    tgt = jnp.asarray([target_node], dtype=jnp.int32)
    pred1, pred2 = gcn_two_pass(
        tgt, a1, cnt,
        x.astype(jnp.bfloat16),
        params["w1"].astype(jnp.bfloat16), params["b1"],
        params["w2"].astype(jnp.bfloat16), params["b2"],
    )
    return pred1, pred2


# ----------------------------------------------------------------------------
# Deterministic synthetic graph / parameters
# ----------------------------------------------------------------------------
def build_example(key):
    N, F, H, C, E = 16, 8, 16, 4, 40
    k_x, k_e, k_m, k_w1, k_w2 = jax.random.split(key, 5)

    x = jax.random.normal(k_x, (N, F), dtype=jnp.float32)
    edge_index = jax.random.randint(k_e, (2, E), 0, N, dtype=jnp.int32)

    # adj_mask ~ Normal(1.0, std), std = gain('relu') * sqrt(2 / (2E))
    std = math.sqrt(2.0) * math.sqrt(2.0 / (2 * E))
    adj_mask = 1.0 + std * jax.random.normal(k_m, (E,), dtype=jnp.float32)

    params = {
        "adj_mask": adj_mask,
        "w1": 0.1 * jax.random.normal(k_w1, (F, H), dtype=jnp.float32),
        "b1": jnp.zeros((1, H), jnp.float32),
        "w2": 0.1 * jax.random.normal(k_w2, (H, C), dtype=jnp.float32),
        "b2": jnp.zeros((1, C), jnp.float32),
    }
    target_node = 3
    return params, x, edge_index, target_node


if __name__ == "__main__":
    params, x, edge_index, target_node = build_example(jax.random.PRNGKey(0))
    pred1, pred2 = explain_model_node_multi_forward(
        params, x, edge_index, target_node)
    jax.block_until_ready((pred1, pred2))
    assert pred1.shape == (4,) and pred2.shape == (4,)
    assert bool(jnp.all(jnp.isfinite(pred1))) and bool(jnp.all(jnp.isfinite(pred2)))
    print("KERNEL_OK")
</pallas_src>

<mosaic_0001>
module attributes {stable_mosaic.version = 11 : i64} {
  func.func @_gcn_two_pass_kernel(%arg0: i32, %arg1: memref<1xi32, #tpu.memory_space<smem>>, %arg2: memref<16x16xf32, #tpu.memory_space<vmem>>, %arg3: memref<16x16xf32, #tpu.memory_space<vmem>>, %arg4: memref<16x8xbf16, #tpu.memory_space<vmem>>, %arg5: memref<8x16xbf16, #tpu.memory_space<vmem>>, %arg6: memref<1x16xf32, #tpu.memory_space<vmem>>, %arg7: memref<16x4xbf16, #tpu.memory_space<vmem>>, %arg8: memref<1x4xf32, #tpu.memory_space<vmem>>, %arg9: memref<2x4xf32, #tpu.memory_space<vmem>>) attributes {dimension_semantics = [#tpu.dimension_semantics<arbitrary>], iteration_bounds = array<i64: 1>, scalar_prefetch = 1 : i64, scratch_operands = 0 : i64, tpu.core_type = #tpu.core_type<tc>, window_params = [{pipeline_mode = #tpu.pipeline_mode<synchronous>, transform_indices = @transform_0, window_bounds = array<i64: 16, 16>}, {pipeline_mode = #tpu.pipeline_mode<synchronous>, transform_indices = @transform_1, window_bounds = array<i64: 16, 16>}, {pipeline_mode = #tpu.pipeline_mode<synchronous>, transform_indices = @transform_2, window_bounds = array<i64: 16, 8>}, {pipeline_mode = #tpu.pipeline_mode<synchronous>, transform_indices = @transform_3, window_bounds = array<i64: 8, 16>}, {pipeline_mode = #tpu.pipeline_mode<synchronous>, transform_indices = @transform_4, window_bounds = array<i64: 1, 16>}, {pipeline_mode = #tpu.pipeline_mode<synchronous>, transform_indices = @transform_5, window_bounds = array<i64: 16, 4>}, {pipeline_mode = #tpu.pipeline_mode<synchronous>, transform_indices = @transform_6, window_bounds = array<i64: 1, 4>}, {pipeline_mode = #tpu.pipeline_mode<synchronous>, transform_indices = @transform_7, window_bounds = array<i64: 2, 4>}]} {
    %c0 = arith.constant 0 : index
    %c0_0 = arith.constant 0 : index
    %0 = vector.load %arg2[%c0, %c0_0] : memref<16x16xf32, #tpu.memory_space<vmem>>, vector<16x16xf32>
    %c0_1 = arith.constant 0 : index
    %c0_2 = arith.constant 0 : index
    %1 = vector.load %arg3[%c0_1, %c0_2] : memref<16x16xf32, #tpu.memory_space<vmem>>, vector<16x16xf32>
    %2 = arith.subf %1, %0 : vector<16x16xf32>
    %c0_3 = arith.constant 0 : index
    %c0_4 = arith.constant 0 : index
    %3 = vector.load %arg4[%c0_3, %c0_4] : memref<16x8xbf16, #tpu.memory_space<vmem>>, vector<16x8xbf16>
    %c0_5 = arith.constant 0 : index
    %c0_6 = arith.constant 0 : index
    %4 = vector.load %arg5[%c0_5, %c0_6] : memref<8x16xbf16, #tpu.memory_space<vmem>>, vector<8x16xbf16>
    %cst = arith.constant dense<0.000000e+00> : vector<16x16xf32>
    %5 = tpu.matmul %3, %4, %cst {dimension_numbers = #tpu.dot_dimension_numbers<[1], [0], [0], [1], [0, 0, 1, 1], [], []>} : vector<16x8xbf16>, vector<8x16xbf16>, vector<16x16xf32> -> vector<16x16xf32>
    %6 = arith.truncf %5 : vector<16x16xf32> to vector<16x16xbf16>
    %7 = tpu.concatenate %0, %2 in 0 : vector<16x16xf32>, vector<16x16xf32> -> vector<32x16xf32>
    %8 = arith.truncf %7 : vector<32x16xf32> to vector<32x16xbf16>
    %cst_7 = arith.constant dense<0.000000e+00> : vector<32x16xf32>
    %9 = tpu.matmul %8, %6, %cst_7 {dimension_numbers = #tpu.dot_dimension_numbers<[1], [0], [0], [1], [0, 0, 1, 1], [], []>} : vector<32x16xbf16>, vector<16x16xbf16>, vector<32x16xf32> -> vector<32x16xf32>
    %c0_8 = arith.constant 0 : index
    %c0_9 = arith.constant 0 : index
    %10 = vector.load %arg6[%c0_8, %c0_9] : memref<1x16xf32, #tpu.memory_space<vmem>>, vector<1x16xf32>
    %11 = vector.broadcast %10 : vector<1x16xf32> to vector<32x16xf32>
    %12 = arith.addf %9, %11 : vector<32x16xf32>
    %cst_10 = arith.constant 0.000000e+00 : f32
    %13 = vector.broadcast %cst_10 : f32 to vector<32x16xf32>
    %14 = arith.maximumf %12, %13 : vector<32x16xf32>
    %15 = arith.truncf %14 : vector<32x16xf32> to vector<32x16xbf16>
    %c0_11 = arith.constant 0 : index
    %c0_12 = arith.constant 0 : index
    %16 = vector.load %arg7[%c0_11, %c0_12] : memref<16x4xbf16, #tpu.memory_space<vmem>>, vector<16x4xbf16>
    %cst_13 = arith.constant dense<0.000000e+00> : vector<32x4xf32>
    %17 = tpu.matmul %15, %16, %cst_13 {dimension_numbers = #tpu.dot_dimension_numbers<[1], [0], [0], [1], [0, 0, 1, 1], [], []>} : vector<32x16xbf16>, vector<16x4xbf16>, vector<32x4xf32> -> vector<32x4xf32>
    %c0_14 = arith.constant 0 : index
    %18 = memref.load %arg1[%c0_14] : memref<1xi32, #tpu.memory_space<smem>>
    %19 = arith.index_cast %18 : i32 to index
    %c0_15 = arith.constant 0 : index
    %20 = vector.load %arg2[%19, %c0_15] : memref<16x16xf32, #tpu.memory_space<vmem>>, vector<1x16xf32>
    %21 = arith.index_cast %18 : i32 to index
    %c0_16 = arith.constant 0 : index
    %22 = vector.load %arg3[%21, %c0_16] : memref<16x16xf32, #tpu.memory_space<vmem>>, vector<1x16xf32>
    %23 = arith.subf %22, %20 : vector<1x16xf32>
    %24 = vector.extract_strided_slice %17 {offsets = [0, 0], sizes = [16, 4], strides = [1, 1]} : vector<32x4xf32> to vector<16x4xf32>
    %cst_17 = arith.constant dense<0.000000e+00> : vector<1x4xf32>
    %25 = tpu.matmul %20, %24, %cst_17 {dimension_numbers = #tpu.dot_dimension_numbers<[1], [0], [0], [1], [0, 0, 1, 1], [], []>} : vector<1x16xf32>, vector<16x4xf32>, vector<1x4xf32> -> vector<1x4xf32>
    %26 = vector.extract_strided_slice %17 {offsets = [16, 0], sizes = [16, 4], strides = [1, 1]} : vector<32x4xf32> to vector<16x4xf32>
    %cst_18 = arith.constant dense<0.000000e+00> : vector<1x4xf32>
    %27 = tpu.matmul %23, %26, %cst_18 {dimension_numbers = #tpu.dot_dimension_numbers<[1], [0], [0], [1], [0, 0, 1, 1], [], []>} : vector<1x16xf32>, vector<16x4xf32>, vector<1x4xf32> -> vector<1x4xf32>
    %28 = tpu.concatenate %25, %27 in 0 : vector<1x4xf32>, vector<1x4xf32> -> vector<2x4xf32>
    %c0_19 = arith.constant 0 : index
    %c0_20 = arith.constant 0 : index
    %29 = vector.load %arg8[%c0_19, %c0_20] : memref<1x4xf32, #tpu.memory_space<vmem>>, vector<1x4xf32>
    %30 = vector.broadcast %29 : vector<1x4xf32> to vector<2x4xf32>
    %31 = arith.addf %28, %30 : vector<2x4xf32>
    %c0_21 = arith.constant 0 : index
    %c0_22 = arith.constant 0 : index
    %32 = vector.load %arg9[%c0_21, %c0_22] : memref<2x4xf32, #tpu.memory_space<vmem>>, vector<2x4xf32>
    tpu.vector_store %arg9[%c0_21, %c0_22], %31 {strides = array<i32>} : memref<2x4xf32, #tpu.memory_space<vmem>>, vector<2x4xf32>,
    return
  }
  func.func @transform_0(%arg0: i32, %arg1: memref<1xi32, #tpu.memory_space<smem>>) -> (i32, i32) {
    %c0_i32 = arith.constant 0 : i32
    %c0_i32_0 = arith.constant 0 : i32
    %c0_i32_1 = arith.constant 0 : i32
    return %c0_i32, %c0_i32_0 : i32, i32
  }
  func.func @transform_1(%arg0: i32, %arg1: memref<1xi32, #tpu.memory_space<smem>>) -> (i32, i32) {
    %c0_i32 = arith.constant 0 : i32
    %c0_i32_0 = arith.constant 0 : i32
    %c0_i32_1 = arith.constant 0 : i32
    return %c0_i32, %c0_i32_0 : i32, i32
  }
  func.func @transform_2(%arg0: i32, %arg1: memref<1xi32, #tpu.memory_space<smem>>) -> (i32, i32) {
    %c0_i32 = arith.constant 0 : i32
    %c0_i32_0 = arith.constant 0 : i32
    %c0_i32_1 = arith.constant 0 : i32
    return %c0_i32, %c0_i32_0 : i32, i32
  }
  func.func @transform_3(%arg0: i32, %arg1: memref<1xi32, #tpu.memory_space<smem>>) -> (i32, i32) {
    %c0_i32 = arith.constant 0 : i32
    %c0_i32_0 = arith.constant 0 : i32
    %c0_i32_1 = arith.constant 0 : i32
    return %c0_i32, %c0_i32_0 : i32, i32
  }
  func.func @transform_4(%arg0: i32, %arg1: memref<1xi32, #tpu.memory_space<smem>>) -> (i32, i32) {
    %c0_i32 = arith.constant 0 : i32
    %c0_i32_0 = arith.constant 0 : i32
    %c0_i32_1 = arith.constant 0 : i32
    return %c0_i32, %c0_i32_0 : i32, i32
  }
  func.func @transform_5(%arg0: i32, %arg1: memref<1xi32, #tpu.memory_space<smem>>) -> (i32, i32) {
    %c0_i32 = arith.constant 0 : i32
    %c0_i32_0 = arith.constant 0 : i32
    %c0_i32_1 = arith.constant 0 : i32
    return %c0_i32, %c0_i32_0 : i32, i32
  }
  func.func @transform_6(%arg0: i32, %arg1: memref<1xi32, #tpu.memory_space<smem>>) -> (i32, i32) {
    %c0_i32 = arith.constant 0 : i32
    %c0_i32_0 = arith.constant 0 : i32
    %c0_i32_1 = arith.constant 0 : i32
    return %c0_i32, %c0_i32_0 : i32, i32
  }
  func.func @transform_7(%arg0: i32, %arg1: memref<1xi32, #tpu.memory_space<smem>>) -> (i32, i32) {
    %c0_i32 = arith.constant 0 : i32
    %c0_i32_0 = arith.constant 0 : i32
    %c0_i32_1 = arith.constant 0 : i32
    return %c0_i32, %c0_i32_0 : i32, i32
  }
}

</mosaic_0001>

<bundles_post_ra>
// kernel: tpu_custom_call.1
= control target key start
LH: loop header
LB: loop body
LE: loop exit
PB: predicated region body
PF: predicated region fallthrough
CT: control target
= control target key end

     0   :  { %14 = vsyncpa [#allocation5], 0  ;;  %s639_s0 = inlined_call_operand.<no memory space> [shape: s32[1], index: 0, kind: input, shape index: {}]   ;;  %s640_s1 = inlined_call_operand.vmem [shape: f32[16,16], index: 1, kind: input, shape index: {}]   ;;  %s641_s2 = inlined_call_operand.hbm [shape: f32[16,16], index: 2, kind: input, shape index: {}]   ;;  %s642_s3 = inlined_call_operand.vmem [shape: bf16[16,8], index: 3, kind: input, shape index: {}]   ;;  %s643_s4 = inlined_call_operand.vmem [shape: bf16[8,16], index: 4, kind: input, shape index: {}]   ;;  %s644_s5 = inlined_call_operand.vmem [shape: f32[1,16], index: 5, kind: input, shape index: {}]   ;;  %s645_s6 = inlined_call_operand.vmem [shape: bf16[16,4], index: 6, kind: input, shape index: {}]   ;;  %s646_s7 = inlined_call_operand.vmem [shape: f32[1,4], index: 7, kind: input, shape index: {}]   ;;  %s647_s8 = inlined_call_operand.hbm [shape: f32[2,4], index: 8, kind: output, shape index: {}]  }
   0x1   :  { %15 = vsyncpa [#allocation6], 0  ;;  %s535_s27 = smov [#allocation4]  }
   0x2   :  { %s23_s28 = sshll.u32 %s535_s27, 4  ;;  %s24_s28 = int_to_ptr.vmem [resolvable:$true] %s23_s28 }
   0x3   :  { %s499_s29 = scalar_lea.vmem %s24_s28, 256  ;;  %p504_p1 = scmp.lt.s32.totalorder %s24_s28, %s24_s28 }
   0x4   :  { %p500_p0 = scmp.ne.s32.totalorder %s24_s28, %s499_s29  ;;  %p505_p2 = scmp.lt.s32.totalorder %s499_s29, %s499_s29 }
   0x6   :  { %p506_p3 = por %p505_p2, %p504_p1 }
   0x8   :  { %p507_p4 = pnand %p506_p3, %p500_p0 }
   0xa   :  { %510 = shalt.err (!%p507_p4)
}
   0xb   :  { %s536_s30 = smov 128   ;;  %s537_s9 = smov 8  }
   0xc   :  { %29 = dma.hbm_to_vmem [thread:$0]  %s641_s2, 256, %s24_s28, [#allocation5], %s536_s30, %s536_s30, %s537_s9  }
   0xd   :  { %531 = dma.done.wait [#allocation5], 256  }
   0xe   :  { %532 = vsyncadd [#allocation5], 4294967040  ;;  %v538_v0 = vmov 0.0   ;;  %vm539_vm0 = vmmov 0   ;;  %vm62_vm1 = vcmask 1043456   ;;  %v489_v3 = vld [vmem:[%s642_s3] sm:$0xff]   ;;  %s243_s23 = scalar_lea.vmem %s640_s1, %s639_s0 }
   0xf   :  { %451 = vmatprep.subr.bf16.mxu0 %v538_v0  ;;  %453 = vmatprep.mubr.msk.bf16.mxu0 %vm539_vm0, %v538_v0  ;;  %v52_v1 = vld [vmem:[%s643_s4] sm:$0xf]  ;;  %vm58_vm2 = vcmask 64512   ;;  %v45_v5 = vld [vmem:[%s640_s1 + $0x8] sm:$0xff]  ;;  %vm117_vm3 = vcmask 130048   ;;  %s245_s26 = scalar_lea.vmem [#allocation4], %s639_s0 }
  0x10   :  { %v64_v2 = vsel %vm62_vm1, %v52_v1, 0  ;;  %v44_v4 = vld [vmem:[%s640_s1] sm:$0xff]  ;;  %v47_v7 = vld [vmem:[#allocation4 + $0x8] sm:$0xff]  ;;  %vm397_vm4 = vcmask 1040384   ;;  %s540_s27 = smov [#allocation7]   ;;  %vm407_vm5 = vcmask 25600  }
  0x11   :  { %452 = vmatpush3.bf16.msra.mxu0 %v64_v2  ;;  %v46_v6 = vld [vmem:[#allocation4] sm:$0xff]  ;;  %v49_v9 = vsub.f32 %v47_v7, %v45_v5  ;;  %v108_v10 = vpack.c.bf16 %v45_v5, %v44_v4  ;;  %s415_s28 = sshll.u32 %s540_s27, 4  ;;  %s416_s28 = int_to_ptr.vmem [resolvable:$true] %s415_s28 }
  0x12   :  { %v48_v8 = vsub.f32 %v46_v6, %v44_v4  ;;  %v490_v17 = vld [vmem:[%s645_s6] sm:$0xff]   ;;  %s511_s29 = scalar_lea.vmem %s416_s28, 32  ;;  %p516_p6 = scmp.lt.s32.totalorder %s416_s28, %s416_s28 }
  0x13   :  { %459 = vmatprep.mubr.msk.bf16.mxu1 %vm117_vm3, %v108_v10  ;;  %463 = vmatprep.subr.bf16.mxu0 %v490_v17  ;;  %v428_v20 = vld [vmem:[%s644_s5] ss:$0 sm:$0xff]  ;;  %p512_p5 = scmp.ne.s32.totalorder %s416_s28, %s511_s29  ;;  %p517_p7 = scmp.lt.s32.totalorder %s511_s29, %s511_s29 }
  0x14   :  { %454 = vmatmul.mubr.msk.bf16.vlgmr.msra.gmra.mxu0 %vm58_vm2, %v489_v3  ;;  %v109_v11 = vpack.c.bf16 %v49_v9, %v48_v8  ;;  %v244_v37 = vld [vmem:[%s243_s23] sm:$0x1] }
  0x15   :  { %464 = vmatpush3.bf16.msra.mxu0 %v490_v17  ;;  %v246_v38 = vld [vmem:[%s245_s26] sm:$0x1]  ;;  %p518_p8 = por %p517_p7, %p516_p6 }
  0x16   :  { %v247_v39 = vsub.f32 %v246_v38, %v244_v37  ;;  %v436_v44 = vld [vmem:[%s646_s7] ss:$0 sm:$0xff] }
  0x17   :  { %p519_p9 = pnand %p518_p8, %p512_p5 }
  0xd4   :  { %v100_v12 = vpop.f32.mrf.mxu0 }
  0xd6   :  { %v455_v13 = vpop.f32.mrf.mxu0 }
  0xd8   :  { %v103_v14 = vpop.f32.mrf.mxu0 }
  0xd9   :  { %v107_v15 = vpack.c.bf16 %v103_v14, %v100_v12 }
  0xda   :  { %v456_v16 = vpop.f32.mrf.mxu0 }
  0xdb   :  { %457 = vmatprep.subr.bf16.mxu1 %v107_v15 }
  0xdc   :  { %458 = vmatpush3.bf16.msra.mxu1 %v107_v15 }
  0xdd   :  { %469 = vmatprep.subr.mxu1 %v538_v0 }
  0xdf   :  { %460 = vmatmul.mubr.msk.bf16.vlgmr.msra.gmra.mxu1 %vm117_vm3, %v109_v11 }
  0xe0   :  { %473 = vmatprep.mubr.msk.f32.mxu1 %vm539_vm0, %v538_v0 }
 0x19f   :  { %v461_v18 = vpop.f32.mrf.mxu1 }
 0x1a0   :  { %v167_v24 = vadd.f32 %v461_v18, %v428_v20 }
 0x1a1   :  { %v158_v19 = vpop.f32.mrf.mxu1 }
 0x1a2   :  { %v159_v22 = vadd.f32 %v428_v20, %v158_v19  ;;  %v175_v30 = vmax.f32 %v167_v24, 0.0 }
 0x1a3   :  { %v462_v21 = vpop.f32.mrf.mxu1 }
 0x1a4   :  { %v170_v23 = vadd.f32 %v462_v21, %v428_v20  ;;  %v173_v28 = vmax.f32 %v159_v22, 0.0 }
 0x1a5   :  { %v161_v25 = vpop.f32.mrf.mxu1 }
 0x1a6   :  { %v162_v26 = vadd.f32 %v428_v20, %v161_v25  ;;  %v176_v27 = vmax.f32 %v170_v23, 0.0 }
 0x1a8   :  { %v174_v29 = vmax.f32 %v162_v26, 0.0  ;;  %v178_v32 = vpack.c.bf16 %v176_v27, %v175_v30 }
 0x1aa   :  { %v177_v31 = vpack.c.bf16 %v174_v29, %v173_v28 }
 0x1ac   :  { %465 = vmatprep.mubr.msk.bf16.mxu0 %vm117_vm3, %v177_v31 }
 0x1ad   :  { %466 = vmatmul.mubr.msk.bf16.vlgmr.msra.gmra.mxu0 %vm117_vm3, %v178_v32 }
 0x26d   :  { %v467_v33 = vpop.f32.mrf.mxu0 }
 0x26f   :  { %v227_v34 = vpop.f32.mrf.mxu0 }
 0x271   :  { %v468_v35 = vpop.f32.mrf.mxu0 }
 0x273   :  { %v230_v36 = vpop.f32.mrf.mxu0 }
 0x274   :  { %470 = vmatpush3.msra.mxu1 %v230_v36 }
 0x275   :  { %471 = vmatprep.subr.mxu1 %v538_v0 }
 0x276   :  { %472 = vmatpush3.msra.mxu1 %v227_v34 }
 0x277   :  { %474 = vmatmul.mubr.msk.f32.vlgmr.msra.gmra.mxu1 %vm117_vm3, %v244_v37  ;;  %476 = vmatprep.subr.mxu1 %v538_v0 }
 0x278   :  { %477 = vmatpush3.msra.mxu1 %v468_v35  ;;  %480 = vmatprep.mubr.msk.f32.mxu1 %vm539_vm0, %v538_v0 }
 0x279   :  { %478 = vmatprep.subr.mxu1 %v538_v0 }
 0x27a   :  { %479 = vmatpush3.msra.mxu1 %v467_v33 }
 0x27b   :  { %481 = vmatmul.mubr.msk.f32.vlgmr.msra.gmra.mxu1 %vm117_vm3, %v247_v39 }
 0x337   :  { %v317_v40 = vpop.f32.mrf.mxu1 }
 0x339   :  { %v475_v41 = vpop.f32.mrf.mxu1 }
 0x33b   :  { %v390_v42 = vpop.f32.mrf.mxu1 }
 0x33c   :  { %v395_v43 = vrot.slane %v390_v42, 7 }
 0x33d   :  { %v482_v45 = vpop.f32.mrf.mxu1 }
 0x33e   :  { %v398_v46 = vsel %vm397_vm4, %v317_v40, %v395_v43 }
 0x33f   :  { %v406_v47 = vadd.f32 %v436_v44, %v398_v46 }
 0x341   :  { %408 = vst.msk [vmem:[#allocation7] sm:$0x3] %vm407_vm5, %v406_v47 }
 0x342   :  { %522 = shalt.err (!%p519_p9)
}
 0x343   :  { %418 = dma.vmem_to_hbm [thread:$0]  %s416_s28, 32, %s647_s8, [#allocation6]  }
 0x344   :  { %533 = dma.done.wait [#allocation6], 32  }
 0x345   :  { %534 = vsyncadd [#allocation6], 4294967264 }
 0x346   :  { %422 = vsyncpa [#allocation5], 1 }
 0x347   :  { %423 = vsyncpa [#allocation6], 1 }

</bundles_post_ra>
